<compile_context>
chip_gen: v5e
topology: v5e:2x2
jax: 0.10.0
libtpu: 0.0.40
codegen_flags: <defaults>
</compile_context>

<pallas_src>
import math

import jax
import jax.numpy as jnp
from jax import lax
from jax.experimental import pallas as pl
from jax.experimental.pallas import tpu as pltpu

EMBED_DIM = 128          # module default embed_dim
N_HEADS = 8              # module default n_heads
HEAD_DIM = EMBED_DIM // N_HEADS
CLIP = 10.0              # module default clip for the SHA logits
NEG_INF = -1e9           # masked-logit value
VMEM_LIMIT_BYTES = 48 * 1024 * 1024   # below v7x's 64 MiB physical VMEM


# ---------------------------------------------------------------------------
# Kernels
# ---------------------------------------------------------------------------
def _static_kernel(node_ref, graph_ref, w_kvk_ref, w_qf_ref, kvk_ref, qf_ref):
    """compute_static for one batch tile (rank-2 / lane-dense everywhere).

    node_ref (TB*N, D)   graph_ref (TB, D)
    w_kvk_ref (D, 3D) = [Wk1.T | Wv.T | Wk2.T]   w_qf_ref (D, D) = Wq_fixed.T
    kvk_ref  (TB*N, 3D) = [K1 | V | K2]          qf_ref  (TB, D) = Q_fixed
    """
    f32 = jnp.float32
    wd = w_kvk_ref.dtype
    # One fused matmul for K1|V|K2; activations cast to the weight dtype in VMEM.
    kvk = jnp.dot(node_ref[...].astype(wd), w_kvk_ref[...],
                  preferred_element_type=f32)
    kvk_ref[...] = kvk.astype(kvk_ref.dtype)
    qf = jnp.dot(graph_ref[...].astype(wd), w_qf_ref[...],
                 preferred_element_type=f32)
    qf_ref[...] = qf.astype(qf_ref.dtype)


def _dynamic_kernel(kvk_ref, qf_ref, step_ref, mask_ref, h_ref, w_qs_ref,
                    w_out_ref, logp_ref, next_ref, ll_ref):
    """compute_dynamic + log_softmax + greedy pick for one batch tile.

    kvk_ref (TB, N, 3D)  qf_ref (TB, D)  step_ref (TB, D)  mask_ref (TB, N)
    h_ref (D, D)  block-diagonal head matrix with 1/sqrt(HEAD_DIM) folded in
    w_qs_ref (D, D) = Wq_step.T    w_out_ref (D, D) = Wout.T / sqrt(D)
    logp_ref (TB, NPAD) lane-dense log-probs (pad lanes ~ NEG_INF)
    next_ref (TB, 1) greedy argmax (int32)   ll_ref (TB, 1) its log-prob
    """
    f32 = jnp.float32
    tb, n, d3 = kvk_ref.shape
    d = d3 // 3
    npad = logp_ref.shape[-1]
    wd = w_qs_ref.dtype

    kvk = kvk_ref[...]                                   # stays in cache dtype (bf16/f32)
    k1 = kvk[:, :, 0 * d:1 * d]
    v = kvk[:, :, 1 * d:2 * d]
    k2 = kvk[:, :, 2 * d:3 * d]
    bias = mask_ref[...].astype(f32) * NEG_INF           # additive mask, one VPU mul

    # Q1 = Wq_fixed(graph) [cached] + Wq_step(step_context)
    q_step = jnp.dot(step_ref[...].astype(wd), w_qs_ref[...],
                     preferred_element_type=f32)
    q1 = qf_ref[...].astype(f32) + q_step                # (TB, D) f32

    # ---- 8-head MHA fused via one block-diagonal (D, D) matmul ----
    # s_full[b,n,d'] = sum_{d in head(d')} q1[b,d]*k1[b,n,d] / sqrt(HEAD_DIM),
    # i.e. per-head scores broadcast to that head's lanes; the masked softmax
    # over nodes then runs lane-dense and IS p_full directly.
    prod = q1.astype(k1.dtype)[:, None, :] * k1          # (TB, N, D), kept in cache dtype
    s = jnp.dot(prod.reshape(tb * n, d), h_ref[...],
                preferred_element_type=f32).reshape(tb, n, d)
    s = s + bias[:, :, None]
    s = s - jnp.max(s, axis=1, keepdims=True)            # softmax over nodes (axis=1)
    e = jnp.exp(s)
    p = e * pl.reciprocal(jnp.sum(e, axis=1, keepdims=True), approx=True)
    mha = jnp.sum((p.astype(v.dtype) * v).astype(f32), axis=1)       # (TB, D)
    q2 = jnp.dot(mha.astype(wd), w_out_ref[...],
                 preferred_element_type=f32)              # Wout (1/sqrt(D) folded in)

    # ---- clipped single-head attention -> per-node logits ----
    att = jnp.sum((q2.astype(k2.dtype)[:, None, :] * k2).astype(f32), axis=-1)
    logits = CLIP * jnp.tanh(att) + bias                  # (TB, N)

    # ---- fused log_softmax + greedy pick (saves 4-5 XLA launches per step) ----
    m = jnp.max(logits, axis=-1, keepdims=True)           # (TB, 1)
    lse = m + jnp.log(jnp.sum(jnp.exp(logits - m), axis=-1, keepdims=True))
    lane = lax.broadcasted_iota(jnp.int32, (tb, n), 1)
    nxt = jnp.min(jnp.where(logits == m, lane, n), axis=-1, keepdims=True)

    if npad > n:                                          # lane-dense output slab
        pad = jnp.full((tb, npad - n), NEG_INF, f32)
        logits_pad = jnp.concatenate([logits, pad], axis=-1)
    else:
        logits_pad = logits
    logp_ref[...] = (logits_pad - lse).astype(logp_ref.dtype)
    next_ref[...] = nxt.astype(jnp.int32)
    ll_ref[...] = (m - lse).astype(ll_ref.dtype)


# ---------------------------------------------------------------------------
# Wrappers
# ---------------------------------------------------------------------------
def prepare_decoder_params(params, dtype=jnp.bfloat16):
    """One-time prep (hoisted out of the decode loop).

    * Transposes PyTorch-style (out, in) weights to (in, out).
    * Fuses Wk1|Wv|Wk2 into a single (D, 3D) matrix.
    * Folds 1/sqrt(HEAD_DIM) into the block-diagonal head matrix H and
      1/sqrt(D) into Wout so no scalar multiplies remain in the kernel.
    * Default bf16 halves the per-step kvk HBM traffic (MXU eats bf16 natively
      with f32 accumulation on v5e/v6e/v7x); pass jnp.float32 for strict checks.
    """
    t = lambda k: jnp.asarray(params[k], jnp.float32).T
    d = t("Wk1").shape[0]
    hd = d // N_HEADS
    head = jnp.arange(d) // hd
    h_mat = (head[:, None] == head[None, :]).astype(jnp.float32) / math.sqrt(hd)
    return {
        "w_kvk": jnp.concatenate([t("Wk1"), t("Wv"), t("Wk2")], axis=1).astype(dtype),
        "w_qf": t("Wq_fixed").astype(dtype),
        "w_qs": t("Wq_step").astype(dtype),
        "w_out": (t("Wout") / math.sqrt(d)).astype(dtype),
        "h_mat": h_mat.astype(dtype),
    }


def _pick_tb(b, n, d, itemsize, *, block_budget_bytes=16 * 1024 * 1024):
    """Largest TB dividing B that (a) keeps block second-minor dims 8-aligned,
    (b) fits a per-step VMEM budget (double-buffered kvk block + f32 temps,
    sized for v7x's 64 MiB VMEM), and (c) prefers grid >= 2 so the parallel
    batch axis shards across v7x's two TensorCores (negligible cost on the
    single-TC v5e/v6e)."""
    divisors = [t for t in range(b, 0, -1) if b % t == 0]

    def aligned(t):
        return t % 8 == 0 or t == b

    def fits(t):
        return (2 * t * n * 3 * d * itemsize + 8 * t * n * d * 4) <= block_budget_bytes

    best = b
    for t in divisors:
        if aligned(t) and fits(t):
            best = t
            break
    if best == b and b > 1:
        for t in divisors:
            if t <= b // 2 and t % 8 == 0 and fits(t):
                return t
    return best


def compute_static_pallas(node_embeddings, graph_embedding, prep, *, tb=None):
    """K1|V|K2 = node @ [Wk1|Wv|Wk2], Q_fixed = graph @ Wq_fixed (cached per rollout step)."""
    b, n, d = node_embeddings.shape
    wd = prep["w_kvk"].dtype
    assert prep["w_kvk"].shape == (d, 3 * d)
    tb = _pick_tb(b, n, d, jnp.dtype(wd).itemsize) if tb is None else tb
    assert b % tb == 0
    node2d = node_embeddings.reshape(b * n, d)    # free contiguous reshape: 2-D, dense tiles
    kvk2d, q_fixed = pl.pallas_call(
        _static_kernel,
        out_shape=(jax.ShapeDtypeStruct((b * n, 3 * d), wd),
                   jax.ShapeDtypeStruct((b, d), wd)),
        grid=(b // tb,),
        in_specs=[
            pl.BlockSpec((tb * n, d), lambda i: (i, 0)),
            pl.BlockSpec((tb, d), lambda i: (i, 0)),
            # Constant index_map -> weights fetched once across the grid.
            pl.BlockSpec((d, 3 * d), lambda i: (0, 0)),
            pl.BlockSpec((d, d), lambda i: (0, 0)),
        ],
        out_specs=(pl.BlockSpec((tb * n, 3 * d), lambda i: (i, 0)),
                   pl.BlockSpec((tb, d), lambda i: (i, 0))),
        compiler_params=pltpu.CompilerParams(
            dimension_semantics=("parallel",),
            vmem_limit_bytes=VMEM_LIMIT_BYTES),
    )(node2d, graph_embedding, prep["w_kvk"], prep["w_qf"])
    return kvk2d.reshape(b, n, 3 * d), q_fixed


def compute_dynamic_pallas(kvk, q_fixed, step_context, mask, prep, *, tb=None):
    """Per-decode-step hot path.

    Returns (log_p_pad (B, NPAD), next_node (B,), ll (B,)) — log_softmax,
    greedy argmax and the gathered log-prob are fused in-kernel; log_p_pad
    lanes >= N hold ~NEG_INF padding (usable directly by a sampler / trainer).
    """
    b, n, d3 = kvk.shape
    d = d3 // 3
    wd = prep["w_qs"].dtype
    tb = _pick_tb(b, n, d, jnp.dtype(wd).itemsize) if tb is None else tb
    assert b % tb == 0
    npad = ((n + 127) // 128) * 128
    step2 = step_context.reshape(b, d)            # producer dtype; cast in VMEM
    mask2 = mask.reshape(b, n)
    if mask2.dtype == jnp.bool_:
        mask2 = mask2.astype(jnp.float32)
    log_p, nxt, ll = pl.pallas_call(
        _dynamic_kernel,
        out_shape=(jax.ShapeDtypeStruct((b, npad), jnp.float32),
                   jax.ShapeDtypeStruct((b, 1), jnp.int32),
                   jax.ShapeDtypeStruct((b, 1), jnp.float32)),
        grid=(b // tb,),
        in_specs=[
            pl.BlockSpec((tb, n, d3), lambda i: (i, 0, 0)),
            pl.BlockSpec((tb, d), lambda i: (i, 0)),
            pl.BlockSpec((tb, d), lambda i: (i, 0)),
            pl.BlockSpec((tb, n), lambda i: (i, 0)),
            pl.BlockSpec((d, d), lambda i: (0, 0)),
            pl.BlockSpec((d, d), lambda i: (0, 0)),
            pl.BlockSpec((d, d), lambda i: (0, 0)),
        ],
        out_specs=(pl.BlockSpec((tb, npad), lambda i: (i, 0)),
                   pl.BlockSpec((tb, 1), lambda i: (i, 0)),
                   pl.BlockSpec((tb, 1), lambda i: (i, 0))),
        compiler_params=pltpu.CompilerParams(
            dimension_semantics=("parallel",),
            vmem_limit_bytes=VMEM_LIMIT_BYTES),
    )(kvk, q_fixed, step2, mask2, prep["h_mat"], prep["w_qs"], prep["w_out"])
    return log_p, nxt[:, 0], ll[:, 0]


def decoder_cell_step(node_embeddings, graph_embedding, step_context, mask,
                      prep, *, tb=None):
    """One decoder step: compute_static (cacheable) + compute_dynamic."""
    kvk, q_fixed = compute_static_pallas(node_embeddings, graph_embedding,
                                         prep, tb=tb)
    return compute_dynamic_pallas(kvk, q_fixed, step_context, mask, prep, tb=tb)


# ---------------------------------------------------------------------------
# Pure-JAX reference (mirrors the PyTorch decoder step)
# ---------------------------------------------------------------------------
def decoder_cell_logits_ref(node_embeddings, graph_embedding, step_context,
                            mask, params):
    def lin(x, W):  # PyTorch nn.Linear(bias=False)
        return jnp.einsum("...i,oi->...o", x, W)

    B, N, D = node_embeddings.shape
    Q_fixed = lin(graph_embedding[:, None, :], params["Wq_fixed"])   # (B,1,D)
    K1 = lin(node_embeddings, params["Wk1"])                         # (B,N,D)
    V = lin(node_embeddings, params["Wv"])
    K2 = lin(node_embeddings, params["Wk2"])
    Q_step = lin(step_context, params["Wq_step"])                    # (B,1,D)
    Q1 = Q_fixed + Q_step

    def split_heads(x):
        return x.reshape(B, -1, N_HEADS, HEAD_DIM).transpose(0, 2, 1, 3)

    q, k, v = split_heads(Q1), split_heads(K1), split_heads(V)
    s = jnp.einsum("bhqd,bhkd->bhqk", q, k) / math.sqrt(HEAD_DIM)
    s = jnp.where(mask[:, None, None, :] > 0.5, NEG_INF, s)
    p = jax.nn.softmax(s, axis=-1)
    o = jnp.einsum("bhqk,bhkd->bhqd", p, v).transpose(0, 2, 1, 3).reshape(B, 1, D)
    Q2 = lin(o, params["Wout"])
    logits = jnp.einsum("bqd,bkd->bqk", Q2, K2) / math.sqrt(D)
    logits = CLIP * jnp.tanh(logits)
    logits = jnp.where(mask[:, None, :] > 0.5, NEG_INF, logits)
    return logits[:, 0, :]


if __name__ == "__main__":
    # max_stacks=4 "nodes", embed_dim=128; batch 16 -> _pick_tb chooses TB=8
    # (grid=2 parallel steps, shards across v7x's two TensorCores).
    B, N, D = 16, 4, EMBED_DIM
    key = jax.random.PRNGKey(0)
    keys = jax.random.split(key, 8)

    params = {
        "Wk1": 0.05 * jax.random.normal(keys[0], (D, D), jnp.float32),
        "Wv": 0.05 * jax.random.normal(keys[1], (D, D), jnp.float32),
        "Wk2": 0.05 * jax.random.normal(keys[2], (D, D), jnp.float32),
        "Wq_fixed": 0.05 * jax.random.normal(keys[3], (D, D), jnp.float32),
        "Wout": 0.05 * jax.random.normal(keys[4], (D, D), jnp.float32),
        "Wq_step": 0.05 * jax.random.normal(keys[5], (D, D), jnp.float32),
    }

    # Stand-ins for the (undefined) encoder / Env outputs.
    node_embeddings = jax.random.normal(keys[6], (B, N, D), jnp.float32)
    graph_embedding = jnp.mean(node_embeddings, axis=1)                  # (B, D)
    step_context = jax.random.normal(keys[7], (B, 1, D), jnp.float32)    # (B,1,D)
    mask = (jnp.zeros((B, N), jnp.float32)
            .at[0, 0].set(1.0).at[3, 2].set(1.0))                        # 1 = masked

    logits_ref = decoder_cell_logits_ref(node_embeddings, graph_embedding,
                                         step_context, mask, params)
    log_p_ref = jax.nn.log_softmax(logits_ref, axis=-1)

    # ---- f32 path: strict numerical check vs. the JAX reference ----
    prep32 = prepare_decoder_params(params, jnp.float32)
    log_p, nxt, ll = jax.block_until_ready(
        decoder_cell_step(node_embeddings, graph_embedding, step_context,
                          mask, prep32))
    assert log_p.shape == (B, 128) and nxt.shape == (B,) and ll.shape == (B,)
    assert jnp.allclose(log_p[:, :N], log_p_ref, atol=5e-2, rtol=2e-2), (
        "Pallas kernel mismatch vs JAX reference (f32)")
    # Fused greedy pick is self-consistent with the emitted log-probs.
    assert jnp.all((nxt >= 0) & (nxt < N))
    assert jnp.array_equal(nxt, jnp.argmax(log_p[:, :N], axis=-1))
    picked = jnp.take_along_axis(log_p[:, :N], nxt[:, None], axis=1)[:, 0]
    assert jnp.allclose(ll, picked, atol=1e-5)

    # ---- bf16 path (default prep dtype; halves kvk-cache HBM traffic) ----
    prep16 = prepare_decoder_params(params)   # bfloat16
    log_p16, nxt16, ll16 = jax.block_until_ready(
        decoder_cell_step(node_embeddings, graph_embedding, step_context,
                          mask, prep16))
    assert log_p16.shape == (B, 128)
    assert jnp.allclose(log_p16[:, :N], log_p_ref, atol=1.0, rtol=1.5e-1), (
        "Pallas kernel mismatch vs JAX reference (bf16)")

    print("KERNEL_OK")
</pallas_src>

<mosaic_0001>
module attributes {stable_mosaic.version = 11 : i64} {
  func.func @_static_kernel(%arg0: i32, %arg1: memref<32x128xf32, #tpu.memory_space<vmem>>, %arg2: memref<8x128xf32, #tpu.memory_space<vmem>>, %arg3: memref<128x384xf32, #tpu.memory_space<vmem>>, %arg4: memref<128x128xf32, #tpu.memory_space<vmem>>, %arg5: memref<32x384xf32, #tpu.memory_space<vmem>>, %arg6: memref<8x128xf32, #tpu.memory_space<vmem>>) attributes {dimension_semantics = [#tpu.dimension_semantics<parallel>], iteration_bounds = array<i64: 2>, scalar_prefetch = 0 : i64, scratch_operands = 0 : i64, tpu.core_type = #tpu.core_type<tc>, window_params = [{transform_indices = @transform_0, window_bounds = array<i64: 32, 128>}, {transform_indices = @transform_1, window_bounds = array<i64: 8, 128>}, {pipeline_mode = #tpu.pipeline_mode<synchronous>, transform_indices = @transform_2, window_bounds = array<i64: 128, 384>}, {pipeline_mode = #tpu.pipeline_mode<synchronous>, transform_indices = @transform_3, window_bounds = array<i64: 128, 128>}, {transform_indices = @transform_4, window_bounds = array<i64: 32, 384>}, {transform_indices = @transform_5, window_bounds = array<i64: 8, 128>}]} {
    %c0 = arith.constant 0 : index
    %c0_0 = arith.constant 0 : index
    %0 = vector.load %arg1[%c0, %c0_0] : memref<32x128xf32, #tpu.memory_space<vmem>>, vector<32x128xf32>
    %c0_1 = arith.constant 0 : index
    %c0_2 = arith.constant 0 : index
    %1 = vector.load %arg3[%c0_1, %c0_2] : memref<128x384xf32, #tpu.memory_space<vmem>>, vector<128x384xf32>
    %cst = arith.constant dense<0.000000e+00> : vector<32x384xf32>
    %2 = tpu.matmul %0, %1, %cst {dimension_numbers = #tpu.dot_dimension_numbers<[1], [0], [0], [1], [0, 0, 1, 1], [], []>} : vector<32x128xf32>, vector<128x384xf32>, vector<32x384xf32> -> vector<32x384xf32>
    %c0_3 = arith.constant 0 : index
    %c0_4 = arith.constant 0 : index
    %3 = vector.load %arg5[%c0_3, %c0_4] : memref<32x384xf32, #tpu.memory_space<vmem>>, vector<32x384xf32>
    tpu.vector_store %arg5[%c0_3, %c0_4], %2 {strides = array<i32>} : memref<32x384xf32, #tpu.memory_space<vmem>>, vector<32x384xf32>,
    %c0_5 = arith.constant 0 : index
    %c0_6 = arith.constant 0 : index
    %4 = vector.load %arg2[%c0_5, %c0_6] : memref<8x128xf32, #tpu.memory_space<vmem>>, vector<8x128xf32>
    %c0_7 = arith.constant 0 : index
    %c0_8 = arith.constant 0 : index
    %5 = vector.load %arg4[%c0_7, %c0_8] : memref<128x128xf32, #tpu.memory_space<vmem>>, vector<128x128xf32>
    %cst_9 = arith.constant dense<0.000000e+00> : vector<8x128xf32>
    %6 = tpu.matmul %4, %5, %cst_9 {dimension_numbers = #tpu.dot_dimension_numbers<[1], [0], [0], [1], [0, 0, 1, 1], [], []>} : vector<8x128xf32>, vector<128x128xf32>, vector<8x128xf32> -> vector<8x128xf32>
    %c0_10 = arith.constant 0 : index
    %c0_11 = arith.constant 0 : index
    %7 = vector.load %arg6[%c0_10, %c0_11] : memref<8x128xf32, #tpu.memory_space<vmem>>, vector<8x128xf32>
    tpu.vector_store %arg6[%c0_10, %c0_11], %6 {strides = array<i32>} : memref<8x128xf32, #tpu.memory_space<vmem>>, vector<8x128xf32>,
    return
  }
  func.func @transform_0(%arg0: i32) -> (i32, i32) {
    %c0_i32 = arith.constant 0 : i32
    %c0_i32_0 = arith.constant 0 : i32
    return %arg0, %c0_i32 : i32, i32
  }
  func.func @transform_1(%arg0: i32) -> (i32, i32) {
    %c0_i32 = arith.constant 0 : i32
    %c0_i32_0 = arith.constant 0 : i32
    return %arg0, %c0_i32 : i32, i32
  }
  func.func @transform_2(%arg0: i32) -> (i32, i32) {
    %c0_i32 = arith.constant 0 : i32
    %c0_i32_0 = arith.constant 0 : i32
    %c0_i32_1 = arith.constant 0 : i32
    return %c0_i32, %c0_i32_0 : i32, i32
  }
  func.func @transform_3(%arg0: i32) -> (i32, i32) {
    %c0_i32 = arith.constant 0 : i32
    %c0_i32_0 = arith.constant 0 : i32
    %c0_i32_1 = arith.constant 0 : i32
    return %c0_i32, %c0_i32_0 : i32, i32
  }
  func.func @transform_4(%arg0: i32) -> (i32, i32) {
    %c0_i32 = arith.constant 0 : i32
    %c0_i32_0 = arith.constant 0 : i32
    return %arg0, %c0_i32 : i32, i32
  }
  func.func @transform_5(%arg0: i32) -> (i32, i32) {
    %c0_i32 = arith.constant 0 : i32
    %c0_i32_0 = arith.constant 0 : i32
    return %arg0, %c0_i32 : i32, i32
  }
}

</mosaic_0001>

<bundles_post_ra>
// kernel: tpu_custom_call.1
= control target key start
LH: loop header
LB: loop body
LE: loop exit
PB: predicated region body
PF: predicated region fallthrough
CT: control target
= control target key end

     0   :  { %s1307_s0 = inlined_call_operand.hbm [shape: f32[64,128], index: 0, kind: input, shape index: {}]   ;;  %s1308_s1 = inlined_call_operand.hbm [shape: f32[16,128], index: 1, kind: input, shape index: {}]   ;;  %s1309_s2 = inlined_call_operand.hbm [shape: f32[128,384], index: 2, kind: input, shape index: {}]   ;;  %s1310_s3 = inlined_call_operand.hbm [shape: f32[128,128], index: 3, kind: input, shape index: {}]   ;;  %s1311_s4 = inlined_call_operand.hbm [shape: f32[64,384], index: 4, kind: output, shape index: {0}]   ;;  %s1312_s5 = inlined_call_operand.hbm [shape: f32[16,128], index: 5, kind: output, shape index: {1}]  }
   0x1   :  { %1316 = sst [smem:[#allocation21_spill]] %s1309_s2 }
   0x2   :  { %1317 = sst [smem:[#allocation22_spill]] %s1310_s3 }
   0x3   :  { %11 = vsyncpa [#allocation3], 0 }
   0x4   :  { %13 = vsyncpa [#allocation3 + $0x1], 0 }
   0x5   :  { %14 = vsyncpa [#allocation6], 0 }
   0x6   :  { %16 = vsyncpa [#allocation6 + $0x1], 0 }
   0x7   :  { %17 = vsyncpa [#allocation9], 0 }
   0x8   :  { %18 = vsyncpa [#allocation4], 0 }
   0x9   :  { %20 = vsyncpa [#allocation4 + $0x1], 0 }
   0xa   :  { %21 = vsyncpa [#allocation12], 0 }
   0xb   :  { %23 = vsyncpa [#allocation12 + $0x1], 0  ;;  %s1082_s18 = smov 0   ;;  %s1084_s19 = smov 0  }
   0xc   :  { %s1086_s20 = smov 0   ;;  %s1088_s21 = smov 0  }
   0xd LB: > { %1318 = sst [smem:[#allocation19_spill]] %s1038_s20  ;;  %s1103_s22 = sadd.s32 4294967295, %s1042_s21   ;;  %s1042_s21 = sphi %s1088_s21, %s1334_s21   ;;  %s1038_s20 = sphi %s1086_s20, %s1331_s20   ;;  %s1034_s19 = sphi %s1084_s19, %s1333_s19   ;;  %s1030_s18 = sphi %s1082_s18, %s1332_s18  }
   0xe   : > { %s703_s23 = sadd.s32 4294967294, %s1042_s21   ;;  %p49_p0 = scmp.ne.s32.totalorder %s1034_s19, %s1030_s18 }
   0xf   : > { %p50_p1 = scmp.eq.s32.totalorder %s1103_s22, 0  ;;  %p141_p2 = scmp.eq.s32.totalorder %s1103_s22, 1 }
  0x10   : > { %p147_p3 = scmp.eq.s32.totalorder %s703_s23, 1  ;;  %p704_p5 = scmp.ge.s32.totalorder %s1042_s21, 1 }
  0x11   : > { %p1112_p4 = por %p50_p1, %p49_p0  ;;  %p180_p7 = scmp.lt.s32.totalorder %s1042_s21, 3 }
  0x12   : > { %p1117_p6 = por %p147_p3, %p49_p0  ;;  %s1321_s2 = sld [smem:[#allocation21_spill]] }
  0x13   : > { %p1125_p8 = pnand %p704_p5, %p180_p7  ;;  %s1044_s30 = smov [#allocation7]  }
  0x14   : > { %s193_s6 = sshll.u32 %s1044_s30, 4  ;;  %s1323_s3 = sld [smem:[#allocation22_spill]]  ;;  %s194_s6 = int_to_ptr.vmem [resolvable:$true] %s193_s6 }
  0x15   : > { %p745_p9 = pneg %p1125_p8  ;;  %s1045_s10 = smov 384  }
  0x16   : > { %s1046_s11 = smov 24   ;;  %s1047_s12 = smov [#allocation8]  }
  0x17   : > { %p746_p10 = pnand %p745_p9, %p50_p1  ;;  %s207_s13 = sshll.u32 %s1047_s12, 4  ;;  %s208_s13 = int_to_ptr.vmem [resolvable:$true] %s207_s13 }
  0x18   : > { %s191_s28 = sshll.u32 %s1321_s2, 4  ;;  %s1313_s14 = smov 128   ;;  %s192_s28 = int_to_ptr.hbm [resolvable:$true] %s191_s28 }
  0x19   : > { %748 = dma.hbm_to_vmem [thread:$0]  (!%p746_p10), %s192_s28, 6144, %s194_s6, [#allocation6], %s1045_s10, %s1045_s10, %s1046_s11  }
  0x1a   : > { %s205_s9 = sshll.u32 %s1323_s3, 4  ;;  %s1314_s15 = smov 8   ;;  %s206_s9 = int_to_ptr.hbm [resolvable:$true] %s205_s9 }
  0x1b   : > { %751 = dma.hbm_to_vmem [thread:$0]  (!%p746_p10), %s206_s9, 2048, %s208_s13, [#allocation9], %s1313_s14, %s1313_s14, %s1314_s15  }
  0x1c   : > { %s1141_s16 = sadd.s32 1, %s1042_s21   ;;  %s36_s23 = sadd.s32 1, %s1038_s20 }
  0x1d   : > { %s33_s17 = ssub.s32 %s1042_s21, %s1141_s16  ;;  %p43_p13 = scmp.ne.s32.totalorder %s1038_s20, %s1034_s19 }
  0x1e   : > { %p34_p12 = scmp.eq.s32.totalorder %s33_s17, 0  ;;  %p44_p0 = scmp.eq.s32.totalorder %s1042_s21, 0 }
  0x1f   : > { %p1154_p5 = por %p141_p2, %p43_p13  ;;  %p768_p7 = scmp.lt.s32.totalorder %s1042_s21, 2 }
  0x20   : > { %s1150_s26 = scalar_select %p34_p12, %s1038_s20, %s36_s23  }
  0x21   : > { %p45_p3 = por %p44_p0, %p43_p13  ;;  %s1160_s28 = sand.u32 1, %s1038_s20  }
  0x22   : > { %1324 = sst [smem:[#allocation20_spill]] %s1150_s26  ;;  %s708_s30 = sshll.u32 %s1160_s28, 5 }
  0x23   : > { %s726_s6 = sshll.u32 %s1042_s21, 5  ;;  %s225_s10 = scalar_lea.vmem [#allocation2], %s708_s30 }
  0x24   : > { %s230_s9 = scalar_lea.hbm %s1307_s0, %s726_s6  ;;  %s233_s11 = sshll.u32 %s225_s10, 4  ;;  %s234_s11 = int_to_ptr.vmem [resolvable:$true] %s233_s11 }
  0x25   : > { %s231_s12 = sshll.u32 %s230_s9, 4  ;;  %p1167_p2 = pnand %p768_p7, %p45_p3  ;;  %s232_s12 = int_to_ptr.hbm [resolvable:$true] %s231_s12 }
  0x26   : > { %s243_s17 = sand.u32 1, %s1042_s21   ;;  %s711_s23 = sshll.u32 %s1160_s28, 3 }
  0x27   : > { %s222_s14 = scalar_lea.sflag [#allocation3], %s1160_s28  ;;  %s872_s15 = sshra.s32 %s232_s12, 4  ;;  %s873_s15 = int_to_ptr.hbm [resolvable:$true] %s872_s15 }
  0x28   : > { %s874_s2 = scalar_lea.hbm %s873_s15, 32  ;;  %p876_p10 = pneg %p1167_p2 }
  0x29   : > { %p875_p9 = scmp.ne.s32.totalorder %s873_s15, %s874_s2  ;;  %s879_s7 = scalar_lea.hbm %s1307_s0, 64 }
  0x2a   : > { %p880_p0 = scmp.lt.s32.totalorder %s873_s15, %s1307_s0  ;;  %p881_p3 = scmp.lt.s32.totalorder %s879_s7, %s874_s2 }
  0x2b   : > { %p877_p12 = pnand %p876_p10, %p875_p9 }
  0x2c   : > { %p882_p7 = por %p881_p3, %p880_p0 }
  0x2d   : > { %p878_p13 = pneg %p877_p12 }
  0x2f   : > { %p883_p11 = pnand %p882_p7, %p878_p13 }
  0x31   : > { %886 = shalt.err (!%p883_p11)
}
  0x32   : > { %s1327_s28 = smov 8   ;;  %s1328_s10 = smov 128  }
  0x33   : > { %755 = dma.hbm_to_vmem [thread:$0]  (!%p1167_p2), %s232_s12, 512, %s234_s11, %s222_s14, %s1328_s10, %s1328_s10, %s1327_s28  }
  0x34   : > { %s712_s3 = sshll.u32 %s1042_s21, 3  ;;  %s247_s20 = scalar_lea.vmem [#allocation5], %s711_s23 }
  0x35   : > { %s251_s6 = scalar_lea.hbm %s1308_s1, %s712_s3  ;;  %s255_s8 = sshll.u32 %s247_s20, 4  ;;  %s256_s8 = int_to_ptr.vmem [resolvable:$true] %s255_s8 }
  0x36   : > { %s253_s15 = sshll.u32 %s251_s6, 4  ;;  %s244_s2 = scalar_lea.sflag [#allocation6], %s243_s17  ;;  %s254_s15 = int_to_ptr.hbm [resolvable:$true] %s253_s15 }
  0x37   : > { %s902_s7 = sshra.s32 %s254_s15, 4  ;;  %s909_s12 = scalar_lea.hbm %s1308_s1, 16  ;;  %s903_s7 = int_to_ptr.hbm [resolvable:$true] %s902_s7 }
  0x38   : > { %s904_s9 = scalar_lea.hbm %s903_s7, 8  ;;  %p910_p13 = scmp.lt.s32.totalorder %s903_s7, %s1308_s1 }
  0x39   : > { %p905_p11 = scmp.ne.s32.totalorder %s903_s7, %s904_s9  ;;  %p911_p0 = scmp.lt.s32.totalorder %s909_s12, %s904_s9 }
  0x3b   : > { %p907_p9 = pnand %p905_p11, %p876_p10  ;;  %p912_p3 = por %p911_p0, %p910_p13 }
  0x3d   : > { %p908_p12 = pneg %p907_p9 }
  0x3f   : > { %p913_p7 = pnand %p912_p3, %p908_p12 }
  0x41   : > { %916 = shalt.err (!%p913_p7)
}
  0x42   : > { %758 = dma.hbm_to_vmem [thread:$0]  (!%p1167_p2), %s254_s15, 128, %s256_s8, %s244_s2  }
  0x43   : > { %264 = sbr.rel (%p1125_p8) target bundleno = 274 (0x112), region = 36  ;;  %s1208_s20 = sand.u32 (!%p1125_p8), 1, %s1034_s19  }
  0x44   : > { %s714_s17 = sshll.u32 (!%p1125_p8), %s1208_s20, 5  ;;  %s267_s23 = scalar_lea.sflag (!%p1125_p8), [#allocation3], %s1208_s20 }
  0x45   : > { %s1212_s28 = scalar_lea.vmem (!%p1125_p8), [#allocation2], %s714_s17 }
  0x48   : > { %1005 = dma.done.wait (%p1112_p4), %s267_s23, 512  }
  0x49   : > { %1007 = vsyncadd (%p1112_p4), %s267_s23, 4294966784  ;;  %s276_s29 = sand.u32 1, %s1103_s22   ;;  %s715_s13 = sshll.u32 %s1208_s20, 3 }
  0x4a   : > { %s277_s10 = scalar_lea.sflag [#allocation6], %s276_s29  ;;  %s1222_s30 = scalar_lea.vmem [#allocation5], %s715_s13 }
  0x4b   : > { %1009 = dma.done.wait (%p1112_p4), %s277_s10, 128  }
  0x4c   : > { %1011 = vsyncadd (%p1112_p4), %s277_s10, 4294967168 }
  0x4d   : > { %1013 = dma.done.wait (%p50_p1), [#allocation6], 6144  }
  0x4e   : > { %1015 = vsyncadd (%p50_p1), [#allocation6], 4294961152 }
  0x4f   : > { %1017 = dma.done.wait (%p50_p1), [#allocation9], 2048  }
  0x50   : > { %1019 = vsyncadd (%p50_p1), [#allocation9], 4294965248  ;;  %v381_v0 = vld [vmem:[#allocation7 + $0x178] sm:$0xff]  ;;  %v378_v1 = vld [vmem:[#allocation7 + $0x160] sm:$0xff]  ;;  %s727_s24 = smul.u32 96, %s1208_s20  ;;  %s723_s8 = sshll.u32 %s1103_s22, 3 }
  0x51   : > { %440 = vmatpush.msra.mxu2 %v381_v0  ;;  %v379_v2 = vld [vmem:[#allocation7 + $0x168] sm:$0xff]  ;;  %v380_v3 = vld [vmem:[#allocation7 + $0x170] sm:$0xff]  ;;  %v377_v6 = vld [vmem:[#allocation7 + $0x158] sm:$0xff]  ;;  %s553_s7 = scalar_lea.hbm %s1312_s5, %s723_s8  ;;  %s327_s9 = scalar_lea.vmem [#allocation11], %s715_s13 }
  0x52   : > { %v375_v4 = vld [vmem:[#allocation7 + $0x148] sm:$0xff]  ;;  %382 = vmatpush.msra.mxu0 %v379_v2  ;;  %411 = vmatpush.msra.mxu1 %v380_v3  ;;  %v376_v5 = vld [vmem:[#allocation7 + $0x150] sm:$0xff]  ;;  %v373_v7 = vld [vmem:[#allocation7 + $0x138] sm:$0xff]  ;;  %s1242_s6 = scalar_lea.vmem [#allocation10], %s727_s24  ;;  %s555_s14 = sshll.u32 %s327_s9, 4  ;;  %s556_s14 = int_to_ptr.vmem [resolvable:$true] %s555_s14 }
  0x53   : > { %441 = vmatpush.msra.mxu2 %v378_v1  ;;  %v374_v8 = vld [vmem:[#allocation7 + $0x140] sm:$0xff]  ;;  %v372_v9 = vld [vmem:[#allocation7 + $0x130] sm:$0xff]  ;;  %v371_v11 = vld [vmem:[#allocation7 + $0x128] sm:$0xff]  ;;  %s557_s11 = sshll.u32 %s553_s7, 4  ;;  %s728_s12 = smul.u32 96, %s1103_s22  ;;  %s558_s11 = int_to_ptr.hbm [resolvable:$true] %s557_s11 }
  0x54   : > { %383 = vmatpush.msra.mxu0 %v376_v5  ;;  %412 = vmatpush.msra.mxu1 %v377_v6  ;;  %v370_v10 = vld [vmem:[#allocation7 + $0x120] sm:$0xff]  ;;  %v369_v12 = vld [vmem:[#allocation7 + $0x118] sm:$0xff]  ;;  %v367_v13 = vld [vmem:[#allocation7 + $0x108] sm:$0xff]  ;;  %s525_s26 = scalar_lea.sflag [#allocation12], %s1208_s20  ;;  %s946_s3 = sshra.s32 %s558_s11, 4  ;;  %s947_s3 = int_to_ptr.hbm [resolvable:$true] %s946_s3 }
  0x55   : > { %442 = vmatpush.msra.mxu2 %v375_v4  ;;  %v368_v14 = vld [vmem:[#allocation7 + $0x110] sm:$0xff]  ;;  %v366_v15 = vld [vmem:[#allocation7 + $0x100] sm:$0xff]  ;;  %v365_v17 = vld [vmem:[#allocation7 + $0xf8] sm:$0xff]  ;;  %s948_s17 = scalar_lea.hbm %s947_s3, 8  ;;  %s952_s29 = scalar_lea.hbm %s1312_s5, 16 }
  0x56   : > { %384 = vmatpush.msra.mxu0 %v373_v7  ;;  %413 = vmatpush.msra.mxu1 %v374_v8  ;;  %v364_v16 = vld [vmem:[#allocation7 + $0xf0] sm:$0xff]  ;;  %v363_v18 = vld [vmem:[#allocation7 + $0xe8] sm:$0xff]  ;;  %v361_v19 = vld [vmem:[#allocation7 + $0xd8] sm:$0xff]  ;;  %p949_p1 = scmp.ne.s32.totalorder %s947_s3, %s948_s17  ;;  %p953_p2 = scmp.lt.s32.totalorder %s947_s3, %s1312_s5 }
  0x57   : > { %443 = vmatpush.msra.mxu2 %v372_v9  ;;  %v362_v20 = vld [vmem:[#allocation7 + $0xe0] sm:$0xff]  ;;  %v497_v21 = vld [vmem:[#allocation8 + $0x78] sm:$0xff]  ;;  %v360_v22 = vld [vmem:[#allocation7 + $0xd0] sm:$0xff]  ;;  %p954_p10 = scmp.lt.s32.totalorder %s952_s29, %s948_s17 }
  0x58   : > { %385 = vmatpush.msra.mxu0 %v370_v10  ;;  %414 = vmatpush.msra.mxu1 %v371_v11  ;;  %v496_v23 = vld [vmem:[#allocation8 + $0x70] sm:$0xff]  ;;  %v358_v24 = vld [vmem:[#allocation7 + $0xc0] sm:$0xff]  ;;  %v359_v25 = vld [vmem:[#allocation7 + $0xc8] sm:$0xff]  ;;  %p950_p4 = pnand %p949_p1, %p1154_p5 }
  0x59   : > { %444 = vmatpush.msra.mxu2 %v369_v12  ;;  %498 = vmatpush.msra.mxu3 %v497_v21  ;;  %v357_v26 = vld [vmem:[#allocation7 + $0xb8] sm:$0xff]  ;;  %v495_v27 = vld [vmem:[#allocation8 + $0x68] sm:$0xff]  ;;  %v356_v29 = vld [vmem:[#allocation7 + $0xb0] sm:$0xff]  ;;  %p955_p11 = por %p954_p10, %p953_p2 }
  0x5a   : > { %386 = vmatpush.msra.mxu0 %v367_v13  ;;  %415 = vmatpush.msra.mxu1 %v368_v14  ;;  %v355_v28 = vld [vmem:[#allocation7 + $0xa8] sm:$0xff]  ;;  %v354_v30 = vld [vmem:[#allocation7 + $0xa0] sm:$0xff]  ;;  %v352_v32 = vld [vmem:[#allocation7 + $0x90] sm:$0xff]  ;;  %p951_p8 = pneg %p950_p4 }
  0x5b   : > { %445 = vmatpush.msra.mxu2 %v366_v15  ;;  %499 = vmatpush.msra.mxu3 %v496_v23  ;;  %v494_v31 = vld [vmem:[#allocation8 + $0x60] sm:$0xff]  ;;  %v353_v33 = vld [vmem:[#allocation7 + $0x98] sm:$0xff]  ;;  %v351_v34 = vld [vmem:[#allocation7 + $0x88] sm:$0xff] }
  0x5c   : > { %387 = vmatpush.msra.mxu0 %v364_v16  ;;  %416 = vmatpush.msra.mxu1 %v365_v17  ;;  %v493_v35 = vld [vmem:[#allocation8 + $0x58] sm:$0xff]  ;;  %v350_v37 = vld [vmem:[#allocation7 + $0x80] sm:$0xff]  ;;  %v348_v38 = vld [vmem:[#allocation7 + $0x70] sm:$0xff]  ;;  %p956_p9 = pnand %p955_p11, %p951_p8 }
  0x5d   : > { %446 = vmatpush.msra.mxu2 %v363_v18  ;;  %500 = vmatpush.msra.mxu3 %v495_v27  ;;  %v349_v36 = vld [vmem:[#allocation7 + $0x78] sm:$0xff]  ;;  %v492_v39 = vld [vmem:[#allocation8 + $0x50] sm:$0xff]  ;;  %v346_v40 = vld [vmem:[#allocation7 + $0x60] sm:$0xff] }
  0x5e   : > { %388 = vmatpush.msra.mxu0 %v361_v19  ;;  %417 = vmatpush.msra.mxu1 %v362_v20  ;;  %v347_v41 = vld [vmem:[#allocation7 + $0x68] sm:$0xff]  ;;  %v345_v42 = vld [vmem:[#allocation7 + $0x58] sm:$0xff]  ;;  %v344_v45 = vld [vmem:[#allocation7 + $0x50] sm:$0xff] }
  0x5f   : > { %447 = vmatpush.msra.mxu2 %v360_v22  ;;  %501 = vmatpush.msra.mxu3 %v494_v31  ;;  %v491_v43 = vld [vmem:[#allocation8 + $0x48] sm:$0xff]  ;;  %v342_v46 = vld [vmem:[#allocation7 + $0x40] sm:$0xff]  ;;  %v340_v48 = vld [vmem:[#allocation7 + $0x30] sm:$0xff] }
  0x60   : > { %389 = vmatpush.msra.mxu0 %v358_v24  ;;  %418 = vmatpush.msra.mxu1 %v359_v25  ;;  %v343_v44 = vld [vmem:[#allocation7 + $0x48] sm:$0xff]  ;;  %v490_v47 = vld [vmem:[#allocation8 + $0x40] sm:$0xff]  ;;  %v341_v49 = vld [vmem:[#allocation7 + $0x38] sm:$0xff] }
  0x61   : > { %448 = vmatpush.msra.mxu2 %v357_v26  ;;  %502 = vmatpush.msra.mxu3 %v493_v35  ;;  %v339_v50 = vld [vmem:[#allocation7 + $0x28] sm:$0xff]  ;;  %v489_v51 = vld [vmem:[#allocation8 + $0x38] sm:$0xff]  ;;  %v338_v53 = vld [vmem:[#allocation7 + $0x20] sm:$0xff] }
  0x62   : > { %390 = vmatpush.msra.mxu0 %v355_v28  ;;  %419 = vmatpush.msra.mxu1 %v356_v29  ;;  %v337_v52 = vld [vmem:[#allocation7 + $0x18] sm:$0xff]  ;;  %v336_v54 = vld [vmem:[#allocation7 + $0x10] sm:$0xff]  ;;  %v334_v57 = vld [vmem:[#allocation7] sm:$0xff] }
  0x63   : > { %449 = vmatpush.msra.mxu2 %v354_v30  ;;  %503 = vmatpush.msra.mxu3 %v492_v39  ;;  %v488_v55 = vld [vmem:[#allocation8 + $0x30] sm:$0xff]  ;;  %v335_v58 = vld [vmem:[#allocation7 + $0x8] sm:$0xff]  ;;  %v486_v60 = vld [vmem:[#allocation8 + $0x20] sm:$0xff] }
  0x64   : > { %391 = vmatpush.msra.mxu0 %v352_v32  ;;  %420 = vmatpush.msra.mxu1 %v353_v33  ;;  %v330_v56 = vld [vmem:[%s1212_s28] sm:$0xff]  ;;  %v487_v59 = vld [vmem:[#allocation8 + $0x28] sm:$0xff]  ;;  %v485_v61 = vld [vmem:[#allocation8 + $0x18] sm:$0xff] }
  0x65   : > { %450 = vmatpush.msra.mxu2 %v351_v34  ;;  %504 = vmatpush.msra.mxu3 %v491_v43  ;;  %v331_v62 = vld [vmem:[%s1212_s28 + $0x8] sm:$0xff]  ;;  %v484_v63 = vld [vmem:[#allocation8 + $0x10] sm:$0xff]  ;;  %v483_v0 = vld [vmem:[#allocation8 + $0x8] sm:$0xff] }
  0x66   : > { %392 = vmatpush.msra.mxu0 %v349_v36  ;;  %421 = vmatpush.msra.mxu1 %v350_v37  ;;  %v482_v1 = vld [vmem:[#allocation8] sm:$0xff]  ;;  %v481_v2 = vld [vmem:[%s1222_s30] sm:$0xff]  ;;  %v333_v4 = vld [vmem:[%s1212_s28 + $0x18] sm:$0xff] }
  0x67   : > { %451 = vmatpush.msra.mxu2 %v348_v38  ;;  %505 = vmatpush.msra.mxu3 %v490_v47  ;;  %v332_v3 = vld [vmem:[%s1212_s28 + $0x10] sm:$0xff] }
  0x68   : > { %393 = vmatpush.msra.mxu0 %v346_v40  ;;  %422 = vmatpush.msra.mxu1 %v347_v41 }
  0x69   : > { %452 = vmatpush.msra.mxu2 %v345_v42  ;;  %506 = vmatpush.msra.mxu3 %v489_v51 }
  0x6a   : > { %394 = vmatpush.msra.mxu0 %v343_v44  ;;  %423 = vmatpush.msra.mxu1 %v344_v45 }
  0x6b   : > { %453 = vmatpush.msra.mxu2 %v342_v46  ;;  %507 = vmatpush.msra.mxu3 %v488_v55 }
  0x6c   : > { %395 = vmatpush.msra.mxu0 %v340_v48  ;;  %424 = vmatpush.msra.mxu1 %v341_v49 }
  0x6d   : > { %454 = vmatpush.msra.mxu2 %v339_v50  ;;  %508 = vmatpush.msra.mxu3 %v487_v59 }
  0x6e   : > { %396 = vmatpush.msra.mxu0 %v337_v52  ;;  %425 = vmatpush.msra.mxu1 %v338_v53 }
  0x6f   : > { %455 = vmatpush.msra.mxu2 %v336_v54  ;;  %509 = vmatpush.msra.mxu3 %v486_v60 }
  0x70   : > { %456 = vmatmul.f32.vlgmr.msra.gmra.mxu2 %v330_v56  ;;  %397 = vmatpush.msra.mxu0 %v334_v57 }
  0x71   : > { %426 = vmatpush.msra.mxu1 %v335_v58  ;;  %398 = vmatmul.f32.vlgmr.msra.gmra.mxu0 %v330_v56 }
  0x72   : > { %427 = vmatmul.f32.vlgmr.msra.gmra.mxu1 %v330_v56  ;;  %510 = vmatpush.msra.mxu3 %v485_v61 }
  0x74   : > { %511 = vmatpush.msra.mxu3 %v484_v63 }
  0x76   : > { %512 = vmatpush.msra.mxu3 %v483_v0 }
  0x78   : > { %459 = vmatmul.f32.gmra.mxu2 %v331_v62  ;;  %513 = vmatpush.msra.mxu3 %v482_v1 }
  0x79   : > { %401 = vmatmul.f32.gmra.mxu0 %v331_v62  ;;  %514 = vmatmul.f32.vlgmr.msra.gmra.mxu3 %v481_v2 }
  0x7a   : > { %430 = vmatmul.f32.gmra.mxu1 %v331_v62 }
  0x80   : > { %462 = vmatmul.f32.gmra.mxu2 %v332_v3 }
  0x81   : > { %404 = vmatmul.f32.gmra.mxu0 %v332_v3 }
  0x82   : > { %433 = vmatmul.f32.gmra.mxu1 %v332_v3 }
  0x88   : > { %465 = vmatmul.f32.gmra.mxu2 %v333_v4 }
  0x89   : > { %407 = vmatmul.f32.gmra.mxu0 %v333_v4 }
  0x8a   : > { %436 = vmatmul.f32.gmra.mxu1 %v333_v4 }
  0xee   : > { %v399_v5 = vpop.f32.mrf.mxu0 }
  0xef   : > { %469 = vst [vmem:[%s1242_s6] sm:$0xff] %v399_v5  ;;  %v428_v6 = vpop.f32.mrf.mxu1 }
  0xf0   : > { %470 = vst [vmem:[%s1242_s6 + $0x8] sm:$0xff] %v428_v6 }
  0xf3   : > { %v457_v7 = vpop.f32.mrf.mxu2 }
  0xf4   : > { %471 = vst [vmem:[%s1242_s6 + $0x10] sm:$0xff] %v457_v7 }
  0xf6   : > { %v402_v8 = vpop.f32.mrf.mxu0 }
  0xf7   : > { %472 = vst [vmem:[%s1242_s6 + $0x18] sm:$0xff] %v402_v8  ;;  %v431_v9 = vpop.f32.mrf.mxu1 }
  0xf8   : > { %473 = vst [vmem:[%s1242_s6 + $0x20] sm:$0xff] %v431_v9 }
  0xfb   : > { %v460_v10 = vpop.f32.mrf.mxu2 }
  0xfc   : > { %474 = vst [vmem:[%s1242_s6 + $0x28] sm:$0xff] %v460_v10  ;;  %v515_v13 = vpop.f32.mrf.mxu3 }
  0xfd   : > { %518 = vst [vmem:[%s327_s9] sm:$0xff] %v515_v13 }
  0xfe   : > { %v405_v11 = vpop.f32.mrf.mxu0 }
  0xff   : > { %475 = vst [vmem:[%s1242_s6 + $0x30] sm:$0xff] %v405_v11  ;;  %v434_v12 = vpop.f32.mrf.mxu1 }
 0x100   : > { %476 = vst [vmem:[%s1242_s6 + $0x38] sm:$0xff] %v434_v12 }
 0x101   : > { %959 = shalt.err (!%p956_p9)
}
 0x102   : > { %742 = dma.vmem_to_hbm [thread:$0]  (%p1154_p5), %s556_s14, 128, %s558_s11, %s525_s26  }
 0x103   : > { %v463_v14 = vpop.f32.mrf.mxu2  ;;  %s537_s24 = scalar_lea.hbm %s1311_s4, %s728_s12  ;;  %s538_s8 = sshll.u32 %s1242_s6, 4  ;;  %s539_s8 = int_to_ptr.vmem [resolvable:$true] %s538_s8 }
 0x104   : > { %477 = vst [vmem:[%s1242_s6 + $0x40] sm:$0xff] %v463_v14  ;;  %s540_s15 = sshll.u32 %s537_s24, 4  ;;  %s520_s2 = scalar_lea.sflag [#allocation4], %s1208_s20  ;;  %s541_s15 = int_to_ptr.hbm [resolvable:$true] %s540_s15 }
 0x105   : > { %s974_s7 = sshra.s32 %s541_s15, 4  ;;  %s980_s12 = scalar_lea.hbm %s1311_s4, 192  ;;  %s975_s7 = int_to_ptr.hbm [resolvable:$true] %s974_s7 }
 0x106   : > { %v408_v15 = vpop.f32.mrf.mxu0  ;;  %s976_s9 = scalar_lea.hbm %s975_s7, 96  ;;  %p981_p3 = scmp.lt.s32.totalorder %s975_s7, %s1311_s4 }
 0x107   : > { %478 = vst [vmem:[%s1242_s6 + $0x48] sm:$0xff] %v408_v15  ;;  %v437_v16 = vpop.f32.mrf.mxu1  ;;  %p977_p12 = scmp.ne.s32.totalorder %s975_s7, %s976_s9  ;;  %p982_p7 = scmp.lt.s32.totalorder %s980_s12, %s976_s9 }
 0x108   : > { %479 = vst [vmem:[%s1242_s6 + $0x50] sm:$0xff] %v437_v16 }
 0x109   : > { %p978_p13 = pnand %p977_p12, %p1154_p5  ;;  %p983_p1 = por %p982_p7, %p981_p3 }
 0x10b   : > { %v466_v17 = vpop.f32.mrf.mxu2  ;;  %p979_p0 = pneg %p978_p13 }
 0x10c   : > { %480 = vst [vmem:[%s1242_s6 + $0x58] sm:$0xff] %v466_v17 }
 0x10d   : > { %p984_p4 = pnand %p983_p1, %p979_p0 }
 0x10f   : > { %987 = shalt.err (!%p984_p4)
}
 0x110   : > { %s1050_s20 = smov 384   ;;  %s1051_s6 = smov 24  }
 0x111   : > { %741 = dma.vmem_to_hbm [thread:$0]  (%p1154_p5), %s539_s8, 1536, %s541_s15, %s520_s2, %s1050_s20, %s1050_s20, %s1051_s6  }
 0x112 PF: > { %s569_s17 = sand.u32 1, %s1030_s18   ;;  %p1329_p8 = scmp.ge.s32.totalorder %s1042_s21, 2 }
 0x113   : > { %s570_s23 = scalar_lea.sflag [#allocation4], %s569_s17 }
 0x114   : > { %p760_p2 = pnand %p1329_p8, %p1117_p6 }
 0x116   : > { %p761_p10 = pneg %p760_p2 }
 0x118   : > { %1021 = dma.done.wait (%p761_p10), %s570_s23, 1536  }
 0x119   : > { %1023 = vsyncadd (%p761_p10), %s570_s23, 4294965760  ;;  %s580_s28 = scalar_lea.sflag [#allocation12], %s569_s17 }
 0x11a   : > { %1025 = dma.done.wait (%p761_p10), %s580_s28, 128  }
 0x11b   : > { %1027 = vsyncadd (%p761_p10), %s580_s28, 4294967168  ;;  %s1330_s29 = sld [smem:[#allocation19_spill]]  ;;  %p26_p5 = scmp.ge.s32.totalorder %s1141_s16, 4  }
 0x11c   : > { %s1331_s20 = sld [smem:[#allocation20_spill]]  ;;  %s1332_s18 = smov %s1034_s19 }
 0x11d   : > { %s1334_s21 = smov %s1141_s16  ;;  %28 = sbr.rel (!%p26_p5) target bundleno = 13 (0xd), region = 119 }
 0x121   : > { %s1333_s19 = smov %s1330_s29 }
 0x122   :  { %586 = vsyncpa [#allocation3], 1 }
 0x123   :  { %588 = vsyncpa [#allocation3 + $0x1], 1 }
 0x124   :  { %589 = vsyncpa [#allocation6], 1 }
 0x125   :  { %591 = vsyncpa [#allocation6 + $0x1], 1 }
 0x126   :  { %592 = vsyncpa [#allocation9], 1 }
 0x127   :  { %593 = vsyncpa [#allocation4], 1 }
 0x128   :  { %595 = vsyncpa [#allocation4 + $0x1], 1 }
 0x129   :  { %596 = vsyncpa [#allocation12], 1 }
 0x12a   :  { %598 = vsyncpa [#allocation12 + $0x1], 1 }

</bundles_post_ra>
